<compile_context>
chip_gen: v6e
topology: v6e:2x2x1
jax: 0.10.0
libtpu: 0.0.40
codegen_flags: <defaults>
</compile_context>

<pallas_src>
import jax
import jax.numpy as jnp
from jax.experimental import pallas as pl
from jax.experimental.pallas import tpu as pltpu

_LANE = 128   # lane width (fast axis)
_SUB = 8      # sublane granularity


def ring_manifold_kernel(theta_ref, w_ref, b_ref, out_ref):
    # theta_ref: [TS, 128]    f32 (VMEM, sublane+lane dense batch tile)
    # w_ref:     [2*D]        f32 (SMEM, row-major flattened W)
    # b_ref:     [D]          f32 (SMEM)
    # out_ref:   [D, TS, 128] f32 (VMEM)
    theta = theta_ref[...]                     # [TS, 128]
    c = jnp.cos(theta)                         # EUP, full vregs
    s = jnp.sin(theta)                         # EUP, full vregs
    d_out = out_ref.shape[0]                   # static (D = 3)
    # Scalar-splat FMAs on full vregs; one unmasked full-block store.
    rows = [c * w_ref[d] + s * w_ref[d_out + d] + b_ref[d]
            for d in range(d_out)]
    out_ref[...] = jnp.stack(rows, axis=0)     # [D, TS, 128], single block store


def _round_up(x, m):
    return ((x + m - 1) // m) * m


def ring_manifold(theta, w, b, *, max_rows_per_tile=2048,
                  lane_dense_output=False):
    """theta: [B, 1] f32, w: [2, D] f32, b: [D] f32  ->  [B, D] f32.

    max_rows_per_tile=2048 -> 256K batch elements / grid step
    (theta 1 MB + out 3 MB per tile, ~8 MB double-buffered).
    """
    B = theta.shape[0]
    D = w.shape[1]

    # Batch laid out as rows of 128 lanes; pad only to the tile granularity.
    n_rows = _round_up(B, _LANE) // _LANE
    n_tiles = pl.cdiv(n_rows, max_rows_per_tile)
    # Keep >= 2 steps when there is enough work (>= 64K elems / tile) so the
    # "parallel" axis actually feeds both TensorCores on v7x.
    if n_rows >= 2 * 512:
        n_tiles = max(n_tiles, 2)
    n_tiles = max(n_tiles, 1)
    ts = _round_up(pl.cdiv(n_rows, n_tiles), _SUB)   # rows per tile
    n_rows_pad = n_tiles * ts
    b_pad = n_rows_pad * _LANE

    theta_flat = theta.reshape(-1).astype(jnp.float32)
    if b_pad != B:
        theta_flat = jnp.pad(theta_flat, (0, b_pad - B))
    theta_2d = theta_flat.reshape(n_rows_pad, _LANE)

    w_flat = w.reshape(-1).astype(jnp.float32)       # [2*D], row-major
    b_f32 = b.astype(jnp.float32)                    # [D]

    out = pl.pallas_call(
        ring_manifold_kernel,
        out_shape=jax.ShapeDtypeStruct((D, n_rows_pad, _LANE), jnp.float32),
        grid_spec=pltpu.PrefetchScalarGridSpec(
            num_scalar_prefetch=0,
            grid=(n_tiles,),
            in_specs=[
                pl.BlockSpec((ts, _LANE), lambda i: (i, 0)),
                pl.BlockSpec(memory_space=pltpu.MemorySpace.SMEM),
                pl.BlockSpec(memory_space=pltpu.MemorySpace.SMEM),
            ],
            out_specs=pl.BlockSpec((D, ts, _LANE), lambda i: (0, i, 0)),
        ),
        compiler_params=pltpu.CompilerParams(
            dimension_semantics=("parallel",)),
    )(theta_2d, w_flat, b_f32)

    if lane_dense_output:
        # NOTE: padded lanes hold cos(0)-based values (theta padded with 0);
        # callers must slice/mask the first B elements before reducing.
        return out

    # Back to the PyTorch layout [B, D] (extra HBM pass; fuse downstream or
    # use lane_dense_output=True to avoid it in a memory-bound deployment).
    return out.reshape(D, b_pad)[:, :B].T


def ring_manifold_ref(theta, w, b):
    # Pure-JAX reference for correctness checking.
    c = jnp.cos(theta)
    s = jnp.sin(theta)
    return c * w[0:1, :] + s * w[1:2, :] + b.reshape(1, -1)


if __name__ == "__main__":
    dim_y = 3

    key = jax.random.PRNGKey(0)
    k_theta, k_w, k_b = jax.random.split(key, 3)

    # Deterministic synthetic parameters (shapes implied by RingManifold(dim_y)).
    w = jax.random.normal(k_w, (2, dim_y), dtype=jnp.float32)
    b = jax.random.normal(k_b, (dim_y,), dtype=jnp.float32)

    # Demo size from the original script (batch=8) plus a non-divisible batch
    # to exercise the ragged-tile padding path.
    for batch in (8, 300):
        theta = jax.random.uniform(
            k_theta, (batch, 1), dtype=jnp.float32,
            minval=0.0, maxval=2.0 * jnp.pi)
        out = jax.block_until_ready(ring_manifold(theta, w, b))
        ref = ring_manifold_ref(theta, w, b)
        assert out.shape == (batch, dim_y)
        assert jnp.allclose(out, ref, atol=1e-5, rtol=1e-5)

    print("KERNEL_OK")
</pallas_src>

<mosaic_0001>
module attributes {stable_mosaic.version = 11 : i64} {
  func.func @ring_manifold_kernel(%arg0: i32, %arg1: memref<8x128xf32, #tpu.memory_space<vmem>>, %arg2: memref<6xf32, #tpu.memory_space<smem>>, %arg3: memref<3xf32, #tpu.memory_space<smem>>, %arg4: memref<3x8x128xf32, #tpu.memory_space<vmem>>) attributes {dimension_semantics = [#tpu.dimension_semantics<parallel>], iteration_bounds = array<i64: 1>, scalar_prefetch = 0 : i64, scratch_operands = 0 : i64, tpu.core_type = #tpu.core_type<tc>, window_params = [{transform_indices = @transform_0, window_bounds = array<i64: 8, 128>}, {transform_indices = @transform_1, window_bounds = array<i64: 6>}, {transform_indices = @transform_2, window_bounds = array<i64: 3>}, {transform_indices = @transform_3, window_bounds = array<i64: 3, 8, 128>}]} {
    %c0 = arith.constant 0 : index
    %c0_0 = arith.constant 0 : index
    %0 = vector.load %arg1[%c0, %c0_0] : memref<8x128xf32, #tpu.memory_space<vmem>>, vector<8x128xf32>
    %1 = math.cos %0 : vector<8x128xf32>
    %2 = math.sin %0 : vector<8x128xf32>
    %c0_1 = arith.constant 0 : index
    %3 = memref.load %arg2[%c0_1] : memref<6xf32, #tpu.memory_space<smem>>
    %4 = vector.broadcast %3 : f32 to vector<8x128xf32>
    %5 = arith.mulf %1, %4 : vector<8x128xf32>
    %c3 = arith.constant 3 : index
    %6 = memref.load %arg2[%c3] : memref<6xf32, #tpu.memory_space<smem>>
    %7 = vector.broadcast %6 : f32 to vector<8x128xf32>
    %8 = arith.mulf %2, %7 : vector<8x128xf32>
    %9 = arith.addf %5, %8 : vector<8x128xf32>
    %c0_2 = arith.constant 0 : index
    %10 = memref.load %arg3[%c0_2] : memref<3xf32, #tpu.memory_space<smem>>
    %11 = vector.broadcast %10 : f32 to vector<8x128xf32>
    %12 = arith.addf %9, %11 : vector<8x128xf32>
    %c1 = arith.constant 1 : index
    %13 = memref.load %arg2[%c1] : memref<6xf32, #tpu.memory_space<smem>>
    %14 = vector.broadcast %13 : f32 to vector<8x128xf32>
    %15 = arith.mulf %1, %14 : vector<8x128xf32>
    %c4 = arith.constant 4 : index
    %16 = memref.load %arg2[%c4] : memref<6xf32, #tpu.memory_space<smem>>
    %17 = vector.broadcast %16 : f32 to vector<8x128xf32>
    %18 = arith.mulf %2, %17 : vector<8x128xf32>
    %19 = arith.addf %15, %18 : vector<8x128xf32>
    %c1_3 = arith.constant 1 : index
    %20 = memref.load %arg3[%c1_3] : memref<3xf32, #tpu.memory_space<smem>>
    %21 = vector.broadcast %20 : f32 to vector<8x128xf32>
    %22 = arith.addf %19, %21 : vector<8x128xf32>
    %c2 = arith.constant 2 : index
    %23 = memref.load %arg2[%c2] : memref<6xf32, #tpu.memory_space<smem>>
    %24 = vector.broadcast %23 : f32 to vector<8x128xf32>
    %25 = arith.mulf %1, %24 : vector<8x128xf32>
    %c5 = arith.constant 5 : index
    %26 = memref.load %arg2[%c5] : memref<6xf32, #tpu.memory_space<smem>>
    %27 = vector.broadcast %26 : f32 to vector<8x128xf32>
    %28 = arith.mulf %2, %27 : vector<8x128xf32>
    %29 = arith.addf %25, %28 : vector<8x128xf32>
    %c2_4 = arith.constant 2 : index
    %30 = memref.load %arg3[%c2_4] : memref<3xf32, #tpu.memory_space<smem>>
    %31 = vector.broadcast %30 : f32 to vector<8x128xf32>
    %32 = arith.addf %29, %31 : vector<8x128xf32>
    %33 = vector.shape_cast %12 : vector<8x128xf32> to vector<1x8x128xf32>
    %34 = vector.shape_cast %22 : vector<8x128xf32> to vector<1x8x128xf32>
    %35 = vector.shape_cast %32 : vector<8x128xf32> to vector<1x8x128xf32>
    %36 = tpu.concatenate %33, %34, %35 in 0 : vector<1x8x128xf32>, vector<1x8x128xf32>, vector<1x8x128xf32> -> vector<3x8x128xf32>
    %c0_5 = arith.constant 0 : index
    %c0_6 = arith.constant 0 : index
    %c0_7 = arith.constant 0 : index
    %37 = vector.load %arg4[%c0_5, %c0_6, %c0_7] : memref<3x8x128xf32, #tpu.memory_space<vmem>>, vector<3x8x128xf32>
    tpu.vector_store %arg4[%c0_5, %c0_6, %c0_7], %36 {strides = array<i32>} : memref<3x8x128xf32, #tpu.memory_space<vmem>>, vector<3x8x128xf32>,
    return
  }
  func.func @transform_0(%arg0: i32) -> (i32, i32) {
    %c0_i32 = arith.constant 0 : i32
    %c0_i32_0 = arith.constant 0 : i32
    return %arg0, %c0_i32 : i32, i32
  }
  func.func @transform_1(%arg0: i32) -> i32 {
    %c0_i32 = arith.constant 0 : i32
    %c0_i32_0 = arith.constant 0 : i32
    return %c0_i32 : i32
  }
  func.func @transform_2(%arg0: i32) -> i32 {
    %c0_i32 = arith.constant 0 : i32
    %c0_i32_0 = arith.constant 0 : i32
    return %c0_i32 : i32
  }
  func.func @transform_3(%arg0: i32) -> (i32, i32, i32) {
    %c0_i32 = arith.constant 0 : i32
    %c0_i32_0 = arith.constant 0 : i32
    %c0_i32_1 = arith.constant 0 : i32
    return %c0_i32, %arg0, %c0_i32_0 : i32, i32, i32
  }
}

</mosaic_0001>

<bundles_post_ra>
// kernel: tpu_custom_call.1
= control target key start
LH: loop header
LB: loop body
LE: loop exit
PB: predicated region body
PF: predicated region fallthrough
CT: control target
= control target key end

     0   :  { %8 = vsyncpa [#allocation3], 0  ;;  %s515_s0 = inlined_call_operand.hbm [shape: f32[8,128], index: 0, kind: input, shape index: {}]   ;;  %s516_s1 = inlined_call_operand.vmem [shape: f32[6], index: 1, kind: input, shape index: {}]   ;;  %s517_s2 = inlined_call_operand.vmem [shape: f32[3], index: 2, kind: input, shape index: {}]   ;;  %s518_s3 = inlined_call_operand.hbm [shape: f32[3,8,128], index: 3, kind: output, shape index: {}]  }
   0x1   :  { %9 = vsyncpa [#allocation5], 0 }
   0x2   :  { %10 = vsyncpa [#allocation8], 0 }
   0x3   :  { %11 = vsyncpa [#allocation4], 0  ;;  %s28_s14 = sshll.u32 %s516_s1, 4  ;;  %s419_s15 = smov [#allocation2]   ;;  %s29_s14 = int_to_ptr.vmem [resolvable:$true] %s28_s14 }
   0x4   :  { %s18_s16 = sshll.u32 %s419_s15, 4  ;;  %s19_s16 = int_to_ptr.vmem [resolvable:$true] %s18_s16 }
   0x5   :  { %s355_s17 = scalar_lea.vmem %s19_s16, 128  ;;  %p360_p1 = scmp.lt.s32.totalorder %s19_s16, %s19_s16 }
   0x6   :  { %p356_p0 = scmp.ne.s32.totalorder %s19_s16, %s355_s17  ;;  %p361_p2 = scmp.lt.s32.totalorder %s355_s17, %s355_s17 }
   0x8   :  { %p362_p3 = por %p361_p2, %p360_p1 }
   0xa   :  { %p363_p4 = pnand %p362_p3, %p356_p0 }
   0xc   :  { %366 = shalt.err (!%p363_p4)
}
   0xd   :  { %21 = dma.hbm_to_vmem [thread:$0]  %s515_s0, 128, %s19_s16, [#allocation3]  }
   0xe   :  { %s367_s20 = scalar_lea.vmem %s29_s14, 16  ;;  %p372_p6 = scmp.lt.s32.totalorder %s29_s14, %s29_s14 }
   0xf   :  { %p368_p5 = scmp.ne.s32.totalorder %s29_s14, %s367_s20  ;;  %p373_p7 = scmp.lt.s32.totalorder %s367_s20, %s367_s20 }
  0x11   :  { %p374_p8 = por %p373_p7, %p372_p6 }
  0x13   :  { %p375_p9 = pnand %p374_p8, %p368_p5 }
  0x15   :  { %378 = shalt.err (!%p375_p9)
}
  0x16   :  { %s420_s1 = smov [#allocation6]   ;;  %s38_s23 = sshll.u32 %s517_s2, 4  ;;  %s39_s23 = int_to_ptr.vmem [resolvable:$true] %s38_s23 }
  0x17   :  { %31 = dma.vmem_to_smem %s29_s14, 16, %s420_s1, [#allocation5]  }
  0x18   :  { %s379_s24 = scalar_lea.vmem %s39_s23, 16  ;;  %p384_p11 = scmp.lt.s32.totalorder %s39_s23, %s39_s23 }
  0x19   :  { %p380_p10 = scmp.ne.s32.totalorder %s39_s23, %s379_s24  ;;  %p385_p12 = scmp.lt.s32.totalorder %s379_s24, %s379_s24 }
  0x1b   :  { %p386_p13 = por %p385_p12, %p384_p11 }
  0x1d   :  { %p387_p0 = pnand %p386_p13, %p380_p10 }
  0x1f   :  { %390 = shalt.err (!%p387_p0)
}
  0x20   :  { %s421_s0 = smov [#allocation7]  }
  0x21   :  { %41 = dma.vmem_to_smem %s39_s23, 16, %s421_s0, [#allocation8]  }
  0x22   :  { %411 = dma.done.wait [#allocation3], 128  }
  0x23   :  { %412 = vsyncadd [#allocation3], 4294967168 }
  0x24   :  { %413 = dma.done.wait [#allocation5], 16  }
  0x25   :  { %414 = vsyncadd [#allocation5], 4294967280 }
  0x26   :  { %415 = dma.done.wait [#allocation8], 16  }
  0x27   :  { %416 = vsyncadd [#allocation8], 4294967280 }
  0x28   :  { %51 = sfence }
  0x29   :  { %v460_v0 = vld [vmem:[#allocation2] sm:$0xff]  ;;  %v422_v12 = vmov 683565275   ;;  %v423_v14 = vmov 2475754826   ;;  %s480_s2 = sld [smem:[#allocation6]] }
  0x2a   :  { %v56_v1 = vand.u32 2139095040, %v460_v0  ;;  %v53_v3 = vand.u32 2147483647, %v460_v0  ;;  %v424_v16 = vmov 2131351028   ;;  %vm55_vm7 = vcmp.lt.s32.totalorder %v460_v0, 0 }
  0x2b   :  { %v425_v18 = vmov 2102212464   ;;  %v426_v20 = vmov 920167782   ;;  %v427_v27 = vmov 1326507024   ;;  %vm145_vm13 = vweird.f32 %v460_v0 }
  0x2c   :  { %v57_v2 = vshrl.u32 %v56_v1, 23  ;;  %v60_v6 = vand.u32 8388607, %v53_v3  ;;  %vm54_vm8 = vcmp.le.f32.partialorder %v53_v3, 0.7853982  ;;  %s482_s25 = sld [smem:[#allocation6 + $0x3]] }
  0x2d   :  { %s484_s26 = sld [smem:[#allocation6 + $0x1]]  ;;  %s428_s6 = smov [#allocation9]  }
  0x2e   :  { %v312_v4 = vadd.s32 4294967169, %v57_v2  ;;  %v61_v9 = vor.u32 8388608, %v60_v6  ;;  %s486_s27 = sld [smem:[#allocation6 + $0x4]]  ;;  %s298_s7 = sshll.u32 %s428_s6, 4  ;;  %s299_s7 = int_to_ptr.vmem [resolvable:$true] %s298_s7 }
  0x2f   :  { %s488_s28 = sld [smem:[#allocation6 + $0x2]]  ;;  %s391_s8 = scalar_lea.vmem %s299_s7, 384 }
  0x30   :  { %v63_v5 = vadd.s32 1, %v312_v4  ;;  %v101_v29 = vshll.u32 %v61_v9, 8  ;;  %s490_s29 = sld [smem:[#allocation6 + $0x5]]  ;;  %p392_p1 = scmp.ne.s32.totalorder %s299_s7, %s391_s8 }
  0x31   :  { %s492_s30 = sld [smem:[#allocation7]]  ;;  %p396_p2 = scmp.lt.s32.totalorder %s299_s7, %s299_s7 }
  0x32   :  { %vm64_vm0 = vcmp.gt.s32.totalorder %v63_v5, 0  ;;  %s494_s4 = sld [smem:[#allocation7 + $0x1]]  ;;  %p397_p3 = scmp.lt.s32.totalorder %s391_s8, %s391_s8 }
  0x33   :  { %v65_v7 = vsel %vm64_vm0, %v63_v5, 0  ;;  %s496_s5 = sld [smem:[#allocation7 + $0x2]] }
  0x34   :  { %v67_v8 = vand.u32 31, %v65_v7  ;;  %v66_v10 = vshrl.u32 %v65_v7, 5  ;;  %p398_p4 = por %p397_p3, %p396_p2 }
  0x36   :  { %v68_v11 = vsub.s32 32, %v67_v8  ;;  %v70_v13 = vshll.u32 %v422_v12, %v67_v8  ;;  %v73_v15 = vshll.u32 %v423_v14, %v67_v8  ;;  %v76_v17 = vshll.u32 %v424_v16, %v67_v8  ;;  %p399_p5 = pnand %p398_p4, %p392_p1 }
  0x37   :  { %v79_v19 = vshll.u32 %v425_v18, %v67_v8  ;;  %v82_v21 = vshll.u32 %v426_v20, %v67_v8  ;;  %vm85_vm1 = vcmp.lt.s32.totalorder %v66_v10, 1  ;;  %vm88_vm2 = vcmp.lt.s32.totalorder %v66_v10, 4 }
  0x38   :  { %v69_v22 = vshrl.u32 %v422_v12, %v68_v11  ;;  %v71_v23 = vshrl.u32 %v423_v14, %v68_v11  ;;  %v74_v24 = vshrl.u32 %v424_v16, %v68_v11  ;;  %v77_v25 = vshrl.u32 %v425_v18, %v68_v11 }
  0x39   :  { %v80_v26 = vshrl.u32 %v426_v20, %v68_v11  ;;  %v83_v28 = vshrl.u32 %v427_v27, %v68_v11  ;;  %vm86_vm3 = vcmp.lt.s32.totalorder %v66_v10, 2  ;;  %vm87_vm4 = vcmp.lt.s32.totalorder %v66_v10, 3 }
  0x3a   :  { %v72_v30 = vor.u32 %v71_v23, %v70_v13  ;;  %v75_v31 = vor.u32 %v74_v24, %v73_v15  ;;  %v78_v32 = vor.u32 %v77_v25, %v76_v17 }
  0x3b   :  { %v81_v33 = vor.u32 %v80_v26, %v79_v19  ;;  %v84_v34 = vor.u32 %v83_v28, %v82_v21  ;;  %v261_v28 = vstv %s480_s2 }
  0x3c   :  { %v89_v35 = vsel %vm85_vm1, %v69_v22, %v72_v30  ;;  %v90_v36 = vsel %vm88_vm2, %v78_v32, 2102212464  ;;  %v93_v37 = vsel %vm85_vm1, %v72_v30, %v75_v31  ;;  %v97_v38 = vsel %vm85_vm1, %v75_v31, %v78_v32 }
  0x3d   :  { %v91_v39 = vsel %vm87_vm4, %v75_v31, %v90_v36  ;;  %v94_v40 = vsel %vm88_vm2, %v81_v33, 920167782  ;;  %v98_v41 = vsel %vm88_vm2, %v84_v34, 1326507024  ;;  %v281_v36 = vstv %s488_s28 }
  0x3e   :  { %v95_v42 = vsel %vm87_vm4, %v78_v32, %v94_v40  ;;  %v99_v43 = vsel %vm87_vm4, %v81_v33, %v98_v41  ;;  %v92_v44 = vsel %vm86_vm3, %v89_v35, %v91_v39  ;;  %v271_v32 = vstv %s484_s26 }
  0x3f   :  { %v96_v45 = vsel %vm86_vm3, %v93_v37, %v95_v42  ;;  %v100_v46 = vsel %vm86_vm3, %v97_v38, %v99_v43  ;;  %v108_v51 = vmul.u32 %v101_v29, %v92_v44  ;;  %v274_v33 = vstv %s486_s27 }
  0x40   :  { %v466_v47 = vmul.u32.u64.low %v101_v29, %v100_v46  ;;  %v467_v48 = vmul.u32.u64.high %v101_v29, %v100_v46, %v466_v47  ;;  %v469_v49 = vmul.u32.u64.low %v101_v29, %v96_v45  ;;  %v470_v50 = vmul.u32.u64.high %v101_v29, %v96_v45, %v469_v49 }
  0x41   :  { %v264_v29 = vstv %s482_s25  ;;  %v284_v37 = vstv %s490_s29  ;;  %v268_v44 = vstv %s492_s30  ;;  %v278_v45 = vstv %s494_s4 }
  0x42   :  { %vm110_vm5 = vc.u32 %v467_v48, %v469_v49  ;;  %v111_v52 = vadd.s32 1, %v470_v50  ;;  %v109_v63 = vadd.s32 %v469_v49, %v467_v48 }
  0x44   :  { %v112_v53 = vsel %vm110_vm5, %v111_v52, %v470_v50  ;;  %v288_v50 = vstv %s496_s5 }
  0x45   :  { %v113_v54 = vadd.s32 %v112_v53, %v108_v51 }
  0x47   :  { %v114_v55 = vadd.s32 536870912, %v113_v54 }
  0x49   :  { %v115_v56 = vshrl.u32 %v114_v55, 30 }
  0x4b   :  { %v116_v57 = vshll.u32 %v115_v56, 30  ;;  %v139_v14 = vsub.s32 4, %v115_v56 }
  0x4d   :  { %v117_v58 = vsub.s32 %v113_v54, %v116_v57  ;;  %v140_v17 = vsel %vm55_vm7, %v139_v14, %v115_v56 }
  0x4e   :  { %v142_v19 = vsel %vm54_vm8, 0, %v140_v17 }
  0x4f   :  { %v119_v59 = vsub.s32 0, %v117_v58  ;;  %v249_v20 = vadd.s32 3, %v142_v19  ;;  %v146_v21 = vand.u32 3, %v142_v19 }
  0x51   :  { %v313_v60 = vmin.u32 %v119_v59, %v117_v58  ;;  %v250_v22 = vand.u32 3, %v249_v20  ;;  %vm151_vm9 = vcmp.eq.s32.totalorder %v146_v21, 2  ;;  %vm148_vm11 = vcmp.eq.s32.totalorder %v146_v21, 0 }
  0x52   :  { %vm147_vm14 = vcmp.lt.s32.totalorder %v146_v21, 2 }
  0x53   :  { %v121_v61 = vclz %v313_v60  ;;  %vm255_vm10 = vcmp.eq.s32.totalorder %v250_v22, 2  ;;  %vm252_vm12 = vcmp.eq.s32.totalorder %v250_v22, 0  ;;  %vm251_vm15 = vcmp.lt.s32.totalorder %v250_v22, 2 }
  0x55   :  { %v314_v62 = vadd.s32 4294967294, %v121_v61 }
  0x57   :  { %vm315_vm6 = vcmp.lt.s32.totalorder %v314_v62, 0 }
  0x58   :  { %v124_v1 = vsel %vm315_vm6, 0, %v314_v62 }
  0x59   :  { %v125_v2 = vsub.s32 32, %v124_v1  ;;  %v126_v4 = vshll.u32 %v117_v58, %v124_v1  ;;  %v129_v5 = vsub.s32 4294967266, %v124_v1 }
  0x5b   :  { %v127_v6 = vshrl.u32 %v109_v63, %v125_v2  ;;  %v130_v7 = vadd.s32 127, %v129_v5 }
  0x5d   :  { %v128_v8 = vor.u32 %v127_v6, %v126_v4  ;;  %v131_v9 = vshll.u32 %v130_v7, 23 }
  0x5f   :  { %v132_v10 = vor.u32 4788187, %v131_v9  ;;  %v135_v11 = vcvt.s32.f32 %v128_v8 }
  0x61   :  { %v133_v12 = vand.u32 2147483647, %v132_v10 }
  0x63   :  { %v136_v13 = vmul.f32 %v135_v11, %v133_v12 }
  0x65   :  { %v137_v15 = vxor.u32 2147483648, %v136_v13 }
  0x67   :  { %v138_v16 = vsel %vm55_vm7, %v137_v15, %v136_v13 }
  0x68   :  { %v141_v18 = vsel %vm54_vm8, %v460_v0, %v138_v16 }
  0x69   :  { %343 = vcosq.f32 %v141_v18 }
  0x6a   :  { %345 = vsinq.f32 %v141_v18 }
  0x76   :  { %v344_v3 = vpop.eup %343 }
  0x77   :  { %v346_v23 = vpop.eup %345  ;;  %v152_v24 = vxor.u32 2147483648, %v344_v3 }
  0x78   :  { %v149_v25 = vxor.u32 2147483648, %v346_v23 }
  0x79   :  { %v153_v26 = vsel %vm151_vm9, %v152_v24, %v346_v23  ;;  %v257_v27 = vsel %vm255_vm10, %v152_v24, %v346_v23 }
  0x7a   :  { %v150_v30 = vsel %vm148_vm11, %v344_v3, %v149_v25  ;;  %v254_v31 = vsel %vm252_vm12, %v344_v3, %v149_v25 }
  0x7b   :  { %v154_v34 = vsel %vm147_vm14, %v150_v30, %v153_v26  ;;  %v258_v35 = vsel %vm251_vm15, %v254_v31, %v257_v27 }
  0x7c   :  { %v155_v38 = vsel %vm145_vm13, nan, %v154_v34  ;;  %v259_v39 = vsel %vm145_vm13, nan, %v258_v35 }
  0x7d   :  { %v262_v40 = vmul.f32 %v261_v28, %v155_v38  ;;  %v265_v41 = vmul.f32 %v264_v29, %v259_v39  ;;  %v272_v42 = vmul.f32 %v271_v32, %v155_v38  ;;  %v275_v43 = vmul.f32 %v274_v33, %v259_v39 }
  0x7e   :  { %v282_v46 = vmul.f32 %v281_v36, %v155_v38  ;;  %v285_v47 = vmul.f32 %v284_v37, %v259_v39 }
  0x7f   :  { %v266_v48 = vadd.f32 %v265_v41, %v262_v40  ;;  %v276_v49 = vadd.f32 %v275_v43, %v272_v42 }
  0x80   :  { %v286_v51 = vadd.f32 %v285_v47, %v282_v46 }
  0x81   :  { %v269_v52 = vadd.f32 %v268_v44, %v266_v48  ;;  %v279_v53 = vadd.f32 %v278_v45, %v276_v49 }
  0x82   :  { %v289_v54 = vadd.f32 %v288_v50, %v286_v51 }
  0x83   :  { %290 = vst [vmem:[#allocation9] sm:$0xff] %v269_v52  ;;  %291 = vst [vmem:[#allocation9 + $0x8] sm:$0xff] %v279_v53 }
  0x84   :  { %292 = vst [vmem:[#allocation9 + $0x10] sm:$0xff] %v289_v54 }
  0x85   :  { %402 = shalt.err (!%p399_p5)
}
  0x86   :  { %s429_s9 = smov 128   ;;  %s430_s10 = smov 8  }
  0x87   :  { %304 = dma.vmem_to_hbm [thread:$0]  %s299_s7, 384, %s518_s3, [#allocation4], %s429_s9, %s429_s9, %s430_s10  }
  0x88   :  { %417 = dma.done.wait [#allocation4], 384  }
  0x89   :  { %418 = vsyncadd [#allocation4], 4294966912 }
  0x8a   :  { %308 = vsyncpa [#allocation3], 1 }
  0x8b   :  { %309 = vsyncpa [#allocation4], 1 }
  0x8c   :  { %310 = vsyncpa [#allocation5], 1 }
  0x8d   :  { %311 = vsyncpa [#allocation8], 1 }

</bundles_post_ra>
